<compile_context>
chip_gen: v7x
topology: tpu7x:2x2x1
jax: 0.10.0
libtpu: 0.0.40
codegen_flags: <defaults>
</compile_context>

<pallas_src>
import jax
import jax.numpy as jnp
from jax.experimental import pallas as pl
from jax.experimental.pallas import tpu as pltpu


_LANE = 128
_MAX_TILE_B = 16384  # 9*16384*4 B = 576 KiB per input block


def _acos(cos):
    # Numerically stable arccos built only from sqrt / atan2 (both lower on
    # Mosaic); exact for cos in [-1, 1]:  acos(c) = 2*atan2(sqrt(1-c), sqrt(1+c)).
    return 2.0 * jnp.arctan2(jnp.sqrt(1.0 - cos), jnp.sqrt(1.0 + cos))


def _theta_block(yp, yt):
    # yp, yt: (9, TB) f32.  trace(A B^T) per lane, then clamp + arccos.
    trace = jnp.sum(yp * yt, axis=0, keepdims=True)            # (1, TB)
    cos = (trace - 1.0) * 0.5
    cos = jnp.clip(cos, -1.0, 1.0)                             # min(.,1) then max(.,-1)
    return _acos(cos)                                          # (1, TB)


def _geodesic_theta_kernel(yp_ref, yt_ref, theta_ref):
    # Lane-dense per-sample theta output block: (1, TB).
    theta_ref[...] = _theta_block(yp_ref[...], yt_ref[...])


def _geodesic_sum_kernel(yp_ref, yt_ref, acc_ref):
    # Fused reduction: acc_ref is a (1, 1) output resident across the grid.
    @pl.when(pl.program_id(0) == 0)
    def _():
        acc_ref[...] = jnp.zeros_like(acc_ref)

    theta = _theta_block(yp_ref[...], yt_ref[...])             # (1, TB)
    acc_ref[...] += jnp.sum(theta, axis=(0, 1), keepdims=True)


def _pick_tiling(b):
    bp = ((b + _LANE - 1) // _LANE) * _LANE
    tb = min(bp, _MAX_TILE_B)
    bp = ((bp + tb - 1) // tb) * tb   # pad batch up to a whole number of tiles
    return bp, tb


def _to_lane_major(r, b, bp):
    # (B, 3, 3) -> (9, Bp) f32, padded columns = identity (theta == 0, so they
    # contribute nothing to the fused sum and are sliced off the theta output).
    m = r.reshape(b, 9).astype(jnp.float32)
    if bp > b:
        pad = jnp.broadcast_to(jnp.eye(3, dtype=jnp.float32).reshape(1, 9), (bp - b, 9))
        m = jnp.concatenate([m, pad], axis=0)
    return m.T  # layout plumbing in the wrapper, not in-kernel


def geodesic_loss_R(ypred, ytrue, reduction="batchmean"):
    """Pallas TPU geodesic_loss_R.forward.

    ypred, ytrue: (B, 3, 3) rotation matrices.
    reduction: 'mean' | 'batchmean' (theta is 1-D so both are the batch mean)
               | anything else -> per-sample theta of shape (B,).
    """
    assert ypred.shape == ytrue.shape and ypred.shape[-2:] == (3, 3)
    B = ypred.shape[0]
    Bp, TB = _pick_tiling(B)

    yp = _to_lane_major(ypred, B, Bp)   # (9, Bp)
    yt = _to_lane_major(ytrue, B, Bp)   # (9, Bp)

    grid = (Bp // TB,)
    in_specs = [
        pl.BlockSpec((9, TB), lambda i: (0, i)),
        pl.BlockSpec((9, TB), lambda i: (0, i)),
    ]

    if reduction in ("mean", "batchmean"):
        # Fused in-kernel sum; single (1,1) HBM writeback, divide by B outside.
        total = pl.pallas_call(
            _geodesic_sum_kernel,
            out_shape=jax.ShapeDtypeStruct((1, 1), jnp.float32),
            grid=grid,
            in_specs=in_specs,
            out_specs=pl.BlockSpec((1, 1), lambda i: (0, 0)),
            compiler_params=pltpu.CompilerParams(
                dimension_semantics=("arbitrary",)),  # reduction axis
        )(yp, yt)
        return total[0, 0] / jnp.float32(B)

    theta2d = pl.pallas_call(
        _geodesic_theta_kernel,
        out_shape=jax.ShapeDtypeStruct((1, Bp), jnp.float32),
        grid=grid,
        in_specs=in_specs,
        out_specs=pl.BlockSpec((1, TB), lambda i: (0, i)),
        compiler_params=pltpu.CompilerParams(
            dimension_semantics=("parallel",)),       # embarrassingly parallel
    )(yp, yt)
    return theta2d[0, :B]  # (B,)


def _random_rotations(key, batch):
    """Deterministic batch of proper rotations via Rodrigues' formula."""
    ka, kt = jax.random.split(key)
    v = jax.random.normal(ka, (batch, 3), dtype=jnp.float32)
    v = v / jnp.sqrt(jnp.sum(v * v, axis=-1, keepdims=True))
    ang = jax.random.uniform(kt, (batch,), minval=0.1, maxval=3.0, dtype=jnp.float32)
    x, y, z = v[:, 0], v[:, 1], v[:, 2]
    zeros = jnp.zeros_like(x)
    K = jnp.stack([
        jnp.stack([zeros, -z, y], axis=-1),
        jnp.stack([z, zeros, -x], axis=-1),
        jnp.stack([-y, x, zeros], axis=-1),
    ], axis=-2)                                              # (B, 3, 3)
    I = jnp.broadcast_to(jnp.eye(3, dtype=jnp.float32), (batch, 3, 3))
    s = jnp.sin(ang)[:, None, None]
    c = jnp.cos(ang)[:, None, None]
    K2 = jnp.einsum("bij,bjk->bik", K, K)
    return (I + s * K + (1.0 - c) * K2).astype(jnp.float32)


if __name__ == "__main__":
    key = jax.random.PRNGKey(0)
    k1, k2 = jax.random.split(key)
    B = 8
    ypred = _random_rotations(k1, B)
    ytrue = _random_rotations(k2, B)

    loss_bm = geodesic_loss_R(ypred, ytrue, reduction="batchmean")
    loss_mean = geodesic_loss_R(ypred, ytrue, reduction="mean")
    theta = geodesic_loss_R(ypred, ytrue, reduction="none")
    jax.block_until_ready((loss_bm, loss_mean, theta))

    # pure-JAX reference (matches the PyTorch forward semantics)
    m = jnp.einsum("bij,bkj->bik", ypred, ytrue)
    cos_ref = (m[:, 0, 0] + m[:, 1, 1] + m[:, 2, 2] - 1.0) * 0.5
    cos_ref = jnp.clip(cos_ref, -1.0, 1.0)
    theta_ref = jnp.arccos(cos_ref)

    assert jnp.allclose(theta, theta_ref, atol=1e-5), (theta, theta_ref)
    assert jnp.allclose(loss_bm, jnp.mean(theta_ref), atol=1e-5), (loss_bm, jnp.mean(theta_ref))
    assert jnp.allclose(loss_mean, jnp.mean(theta_ref), atol=1e-5), (loss_mean,)

    print("KERNEL_OK")
</pallas_src>

<mosaic_0001>
module attributes {stable_mosaic.version = 11 : i64} {
  func.func @_geodesic_sum_kernel(%arg0: i32, %arg1: memref<9x128xf32, #tpu.memory_space<vmem>>, %arg2: memref<9x128xf32, #tpu.memory_space<vmem>>, %arg3: memref<1x1xf32, #tpu.memory_space<vmem>>) attributes {dimension_semantics = [#tpu.dimension_semantics<arbitrary>], iteration_bounds = array<i64: 1>, scalar_prefetch = 0 : i64, scratch_operands = 0 : i64, tpu.core_type = #tpu.core_type<tc>, window_params = [{transform_indices = @transform_0, window_bounds = array<i64: 9, 128>}, {transform_indices = @transform_1, window_bounds = array<i64: 9, 128>}, {pipeline_mode = #tpu.pipeline_mode<synchronous>, transform_indices = @transform_2, window_bounds = array<i64: 1, 1>}]} {
    %c0_i32 = arith.constant 0 : i32
    %0 = arith.cmpi eq, %arg0, %c0_i32 : i32
    %1 = arith.extui %0 : i1 to i32
    %c0_i32_0 = arith.constant 0 : i32
    %2 = arith.cmpi ne, %1, %c0_i32_0 : i32
    scf.if %2 {
      %cst_16 = arith.constant 0.000000e+00 : f32
      %33 = vector.broadcast %cst_16 : f32 to vector<1x1xf32>
      %c0_17 = arith.constant 0 : index
      %c0_18 = arith.constant 0 : index
      %34 = vector.load %arg3[%c0_17, %c0_18] : memref<1x1xf32, #tpu.memory_space<vmem>>, vector<1x1xf32>
      tpu.vector_store %arg3[%c0_17, %c0_18], %33 {strides = array<i32>} : memref<1x1xf32, #tpu.memory_space<vmem>>, vector<1x1xf32>,
    } else {
    }
    %c0 = arith.constant 0 : index
    %c0_1 = arith.constant 0 : index
    %3 = vector.load %arg1[%c0, %c0_1] : memref<9x128xf32, #tpu.memory_space<vmem>>, vector<9x128xf32>
    %c0_2 = arith.constant 0 : index
    %c0_3 = arith.constant 0 : index
    %4 = vector.load %arg2[%c0_2, %c0_3] : memref<9x128xf32, #tpu.memory_space<vmem>>, vector<9x128xf32>
    %5 = arith.mulf %3, %4 : vector<9x128xf32>
    %cst = arith.constant dense<0.000000e+00> : vector<128xf32>
    %6 = vector.multi_reduction <add>, %5, %cst [0] : vector<9x128xf32> to vector<128xf32>
    %7 = vector.shape_cast %6 : vector<128xf32> to vector<1x128xf32>
    %cst_4 = arith.constant 1.000000e+00 : f32
    %8 = vector.broadcast %cst_4 : f32 to vector<1x128xf32>
    %9 = arith.subf %7, %8 : vector<1x128xf32>
    %cst_5 = arith.constant 5.000000e-01 : f32
    %10 = vector.broadcast %cst_5 : f32 to vector<1x128xf32>
    %11 = arith.mulf %9, %10 : vector<1x128xf32>
    %cst_6 = arith.constant -1.000000e+00 : f32
    %cst_7 = arith.constant 1.000000e+00 : f32
    %12 = vector.broadcast %cst_6 : f32 to vector<1x128xf32>
    %13 = arith.maximumf %12, %11 : vector<1x128xf32>
    %14 = vector.broadcast %cst_7 : f32 to vector<1x128xf32>
    %15 = arith.minimumf %14, %13 : vector<1x128xf32>
    %cst_8 = arith.constant 1.000000e+00 : f32
    %16 = vector.broadcast %cst_8 : f32 to vector<1x128xf32>
    %17 = arith.subf %16, %15 : vector<1x128xf32>
    %18 = math.sqrt %17 : vector<1x128xf32>
    %cst_9 = arith.constant 1.000000e+00 : f32
    %19 = vector.broadcast %cst_9 : f32 to vector<1x128xf32>
    %20 = arith.addf %19, %15 : vector<1x128xf32>
    %21 = math.sqrt %20 : vector<1x128xf32>
    %22 = math.atan2 %18, %21 : vector<1x128xf32>
    %cst_10 = arith.constant 2.000000e+00 : f32
    %23 = vector.broadcast %cst_10 : f32 to vector<1x128xf32>
    %24 = arith.mulf %23, %22 : vector<1x128xf32>
    %c0_11 = arith.constant 0 : index
    %c0_12 = arith.constant 0 : index
    %25 = vector.load %arg3[%c0_11, %c0_12] : memref<1x1xf32, #tpu.memory_space<vmem>>, vector<1x1xf32>
    %26 = vector.shape_cast %24 : vector<1x128xf32> to vector<1x1x128xf32>
    %cst_13 = arith.constant dense<0.000000e+00> : vector<1xf32>
    %27 = vector.multi_reduction <add>, %26, %cst_13 [1, 2] : vector<1x1x128xf32> to vector<1xf32>
    %28 = vector.shape_cast %27 : vector<1xf32> to vector<1x1x1xf32>
    %29 = vector.extract %28[0, 0, 0] : f32 from vector<1x1x1xf32>
    %30 = vector.broadcast %29 : f32 to vector<1x1xf32>
    %31 = arith.addf %25, %30 : vector<1x1xf32>
    %c0_14 = arith.constant 0 : index
    %c0_15 = arith.constant 0 : index
    %32 = vector.load %arg3[%c0_14, %c0_15] : memref<1x1xf32, #tpu.memory_space<vmem>>, vector<1x1xf32>
    tpu.vector_store %arg3[%c0_14, %c0_15], %31 {strides = array<i32>} : memref<1x1xf32, #tpu.memory_space<vmem>>, vector<1x1xf32>,
    return
  }
  func.func @transform_0(%arg0: i32) -> (i32, i32) {
    %c0_i32 = arith.constant 0 : i32
    %c0_i32_0 = arith.constant 0 : i32
    return %c0_i32, %arg0 : i32, i32
  }
  func.func @transform_1(%arg0: i32) -> (i32, i32) {
    %c0_i32 = arith.constant 0 : i32
    %c0_i32_0 = arith.constant 0 : i32
    return %c0_i32, %arg0 : i32, i32
  }
  func.func @transform_2(%arg0: i32) -> (i32, i32) {
    %c0_i32 = arith.constant 0 : i32
    %c0_i32_0 = arith.constant 0 : i32
    %c0_i32_1 = arith.constant 0 : i32
    return %c0_i32, %c0_i32_0 : i32, i32
  }
}

</mosaic_0001>

<bundles_post_ra>
// kernel: tpu_custom_call.1
= control target key start
LH: loop header
LB: loop body
LE: loop exit
PB: predicated region body
PF: predicated region fallthrough
CT: control target
= control target key end

     0   :  { %7 = vsyncpa [#allocation3], 0  ;;  %s313_s0 = inlined_call_operand.hbm [shape: f32[9,128], index: 0, kind: input, shape index: {}]   ;;  %s314_s1 = inlined_call_operand.hbm [shape: f32[9,128], index: 1, kind: input, shape index: {}]   ;;  %s315_s2 = inlined_call_operand.hbm [shape: f32[1,1], index: 2, kind: output, shape index: {}]  }
   0x1   :  { %8 = vsyncpa [#allocation6], 0 }
   0x2   :  { %9 = vsyncpa [#allocation4], 0  ;;  %s249_s9 = smov [#allocation2]   ;;  %s177_s13 = scalar_lea.hbm %s313_s0, 256 }
   0x3   :  { %s15_s10 = sshll.u32 %s249_s9, 4  ;;  %p178_p0 = scmp.ne.s32.totalorder %s313_s0, %s177_s13  ;;  %s16_s10 = int_to_ptr.vmem [resolvable:$true] %s15_s10 }
   0x4   :  { %p181_p1 = scmp.lt.u32.totalorder %s177_s13, %s313_s0 }
   0x6   :  { %p183_p2 = pnand %p181_p1, %p178_p0 }
   0x8   :  { %186 = shalt.err (!%p183_p2)
}
   0x9   :  { %s187_s18 = scalar_lea.vmem %s16_s10, 256  ;;  %p192_p4 = scmp.lt.s32.totalorder %s16_s10, %s16_s10 }
   0xa   :  { %p188_p3 = scmp.ne.s32.totalorder %s16_s10, %s187_s18  ;;  %p193_p5 = scmp.lt.s32.totalorder %s187_s18, %s187_s18 }
   0xc   :  { %p194_p6 = por %p193_p5, %p192_p4 }
   0xe   :  { %p195_p7 = pnand %p194_p6, %p188_p3 }
  0x10   :  { %198 = shalt.err (!%p195_p7)
}
  0x11   :  { %s250_s19 = smov 128   ;;  %s251_s20 = smov 8  }
  0x12   :  { %21 = dma.hbm_to_vmem [thread:$0]  %s313_s0, 256, %s16_s10, [#allocation3], %s250_s19, %s250_s19, %s251_s20  }
  0x13   :  { %s252_s23 = smov [#allocation5]   ;;  %s199_s27 = scalar_lea.hbm %s314_s1, 256 }
  0x14   :  { %s27_s24 = sshll.u32 %s252_s23, 4  ;;  %p200_p8 = scmp.ne.s32.totalorder %s314_s1, %s199_s27  ;;  %s28_s24 = int_to_ptr.vmem [resolvable:$true] %s27_s24 }
  0x15   :  { %p203_p9 = scmp.lt.u32.totalorder %s199_s27, %s314_s1 }
  0x17   :  { %p205_p10 = pnand %p203_p9, %p200_p8 }
  0x19   :  { %208 = shalt.err (!%p205_p10)
}
  0x1a   :  { %s209_s4 = scalar_lea.vmem %s28_s24, 256  ;;  %p214_p12 = scmp.lt.s32.totalorder %s28_s24, %s28_s24 }
  0x1b   :  { %p210_p11 = scmp.ne.s32.totalorder %s28_s24, %s209_s4  ;;  %p215_p13 = scmp.lt.s32.totalorder %s209_s4, %s209_s4 }
  0x1d   :  { %p216_p0 = por %p215_p13, %p214_p12 }
  0x1f   :  { %p217_p1 = pnand %p216_p0, %p210_p11 }
  0x21   :  { %220 = shalt.err (!%p217_p1)
}
  0x22   :  { %33 = dma.hbm_to_vmem [thread:$0]  %s314_s1, 256, %s28_s24, [#allocation6], %s250_s19, %s250_s19, %s251_s20  }
  0x23   :  { %243 = dma.done.wait [#allocation3], 256  }
  0x24   :  { %244 = vsyncadd [#allocation3], 4294967040 }
  0x25   :  { %245 = dma.done.wait [#allocation6], 256  }
  0x26   :  { %246 = vsyncadd [#allocation6], 4294967040  ;;  %vm44_vm0 = vcmask 0   ;;  %v253_v0 = vmov 0.0   ;;  %v46_v1 = vld [vmem:[#allocation2] sm:$0xff]  ;;  %v48_v3 = vld [vmem:[#allocation5] sm:$0xff] }
  0x27   :  { %45 = vst.msk [vmem:[#allocation7] sm:$0x1] %vm44_vm0, %v253_v0  ;;  %v47_v2 = vld [vmem:[#allocation2 + $0x8] sm:$0x1]  ;;  %v49_v4 = vld [vmem:[#allocation5 + $0x8] sm:$0x1]  ;;  %v50_v5 = vmul.f32 %v48_v3, %v46_v1 }
  0x28   :  { %vm52_vm1 = vcmask 1040384   ;;  %v51_v6 = vmul.f32 %v49_v4, %v47_v2  ;;  %v254_v59 = vmov 0.7853982   ;;  %s255_s1 = smov [#allocation7]  }
  0x29   :  { %s150_s6 = sshll.u32 %s255_s1, 4  ;;  %s151_s6 = int_to_ptr.vmem [resolvable:$true] %s150_s6 }
  0x2a   :  { %v53_v7 = vsel %vm52_vm1, %v51_v6, 0.0  ;;  %s221_s8 = scalar_lea.vmem %s151_s6, 16  ;;  %s225_s9 = scalar_lea.vmem %s151_s6, 32 }
  0x2b   :  { %v54_v8 = vadd.f32 %v53_v7, %v50_v5  ;;  %p222_p2 = scmp.ne.s32.totalorder %s151_s6, %s221_s8  ;;  %p226_p3 = scmp.lt.s32.totalorder %s151_s6, %s151_s6 }
  0x2c   :  { %p227_p4 = scmp.lt.s32.totalorder %s225_s9, %s221_s8 }
  0x2d   :  { %v55_v9 = vrot.slane %v54_v8, 4 }
  0x2e   :  { %p228_p5 = por %p227_p4, %p226_p3 }
  0x2f   :  { %v56_v10 = vadd.f32 %v55_v9, %v54_v8 }
  0x30   :  { %p229_p6 = pnand %p228_p5, %p222_p2 }
  0x31   :  { %v57_v11 = vrot.slane %v56_v10, 2 }
  0x33   :  { %v58_v12 = vadd.f32 %v57_v11, %v56_v10 }
  0x35   :  { %v59_v13 = vrot.slane %v58_v12, 1 }
  0x37   :  { %v60_v14 = vadd.f32 %v59_v13, %v58_v12  ;;  %v129_v12 = vld [vmem:[#allocation7] sm:$0x1] }
  0x39   :  { %v160_v15 = vadd.f32 -1.0, %v60_v14 }
  0x3b   :  { %v62_v16 = vmul.f32 0.5, %v160_v15 }
  0x3d   :  { %v161_v17 = vclamps-f32 %v62_v16, 1.0 }
  0x3f   :  { %v65_v18 = vsub.f32 1.0, %v161_v17  ;;  %v73_v19 = vadd.f32 1.0, %v161_v17 }
  0x41   :  { %171 = vrsqrt.f32 %v65_v18  ;;  %vm68_vm2 = vcmp.eq.f32.partialorder %v65_v18, inf  ;;  %v71_v21 = vand.u32 2147483648, %v65_v18  ;;  %vm70_vm3 = vcmp.eq.f32.partialorder %v65_v18, 0.0 }
  0x42   :  { %173 = vrsqrt.f32 %v73_v19  ;;  %vm76_vm4 = vcmp.eq.f32.partialorder %v73_v19, inf  ;;  %v79_v24 = vand.u32 2147483648, %v73_v19  ;;  %vm78_vm5 = vcmp.eq.f32.partialorder %v73_v19, 0.0 }
  0x4b   :  { %v172_v20 = vpop.eup %171 }
  0x4c   :  { %v174_v22 = vpop.eup %173  ;;  %v67_v23 = vmul.f32 %v172_v20, %v65_v18 }
  0x4d   :  { %v75_v25 = vmul.f32 %v174_v22, %v73_v19 }
  0x4e   :  { %v69_v26 = vsel %vm68_vm2, %v65_v18, %v67_v23 }
  0x4f   :  { %v72_v27 = vsel %vm70_vm3, %v71_v21, %v69_v26  ;;  %v77_v28 = vsel %vm76_vm4, %v73_v19, %v75_v25 }
  0x50   :  { %v80_v29 = vsel %vm78_vm5, %v79_v24, %v77_v28  ;;  %v82_v30 = vand.u32 2147483647, %v72_v27  ;;  %vm116_vm9 = vcmp.ne.f32.partialorder %v72_v27, %v72_v27  ;;  %vm113_vm13 = vcmp.eq.f32.partialorder %v72_v27, 0.0 }
  0x51   :  { %v81_v31 = vand.u32 2147483647, %v80_v29  ;;  %vm111_vm7 = vcmp.lt.s32.totalorder %v80_v29, 0  ;;  %vm115_vm8 = vcmp.ne.f32.partialorder %v80_v29, %v80_v29  ;;  %vm108_vm10 = vcmp.lt.f32.partialorder %v80_v29, 0.0 }
  0x52   :  { %vm122_vm12 = vcmp.eq.s32.totalorder %v82_v30, inf  ;;  %v112_v57 = vsel %vm111_vm7, 3.1415927, %v253_v0  ;;  %vm117_vm14 = vmor %vm115_vm8, %vm116_vm9  ;;  %v120_v60 = vsel %vm108_vm10, 2.3561945, %v254_v59  ;;  %v126_v63 = vand.u32 2147483648, %v72_v27 }
  0x53   :  { %v84_v32 = vmax.f32 %v81_v31, %v82_v30  ;;  %v83_v33 = vmin.f32 %v81_v31, %v82_v30  ;;  %vm105_vm6 = vcmp.gt.f32.partialorder %v82_v30, %v81_v31  ;;  %vm121_vm11 = vcmp.eq.s32.totalorder %v81_v31, inf }
  0x54   :  { %vm123_vm15 = vmand %vm121_vm11, %vm122_vm12 }
  0x55   :  { %175 = vrcp.f32 %v84_v32 }
  0x5f   :  { %v176_v34 = vpop.eup %175 }
  0x60   :  { %v86_v35 = vmul.f32 %v176_v34, %v83_v33 }
  0x62   :  { %v87_v36 = vmul.f32 %v86_v35, %v86_v35 }
  0x64   :  { %v88_v37 = vmul.f32 0.002785687, %v87_v36 }
  0x66   :  { %v89_v38 = vadd.f32 -0.015866, %v88_v37 }
  0x68   :  { %v90_v39 = vmul.f32 %v89_v38, %v87_v36 }
  0x6a   :  { %v91_v40 = vadd.f32 0.04247222, %v90_v39 }
  0x6c   :  { %v92_v41 = vmul.f32 %v91_v40, %v87_v36 }
  0x6e   :  { %v93_v42 = vadd.f32 -0.074975304, %v92_v41 }
  0x70   :  { %v94_v43 = vmul.f32 %v93_v42, %v87_v36 }
  0x72   :  { %v95_v44 = vadd.f32 0.1064488, %v94_v43 }
  0x74   :  { %v96_v45 = vmul.f32 %v95_v44, %v87_v36 }
  0x76   :  { %v97_v46 = vadd.f32 -0.14207031, %v96_v45 }
  0x78   :  { %v98_v47 = vmul.f32 %v97_v46, %v87_v36 }
  0x7a   :  { %v99_v48 = vadd.f32 0.19993454, %v98_v47 }
  0x7c   :  { %v100_v49 = vmul.f32 %v99_v48, %v87_v36 }
  0x7e   :  { %v101_v50 = vadd.f32 -0.33333147, %v100_v49 }
  0x80   :  { %v102_v51 = vmul.f32 %v101_v50, %v87_v36 }
  0x82   :  { %v103_v52 = vmul.f32 %v102_v51, %v86_v35 }
  0x84   :  { %v104_v53 = vadd.f32 %v103_v52, %v86_v35 }
  0x86   :  { %v106_v54 = vsub.f32 1.5707964, %v104_v53 }
  0x88   :  { %v107_v55 = vsel %vm105_vm6, %v106_v54, %v104_v53 }
  0x89   :  { %v109_v56 = vsub.f32 3.1415927, %v107_v55 }
  0x8b   :  { %v110_v58 = vsel %vm108_vm10, %v109_v56, %v107_v55 }
  0x8c   :  { %v114_v61 = vsel %vm113_vm13, %v112_v57, %v110_v58 }
  0x8d   :  { %v118_v62 = vsel %vm117_vm14, nan, %v114_v61 }
  0x8e   :  { %v124_v1 = vsel %vm123_vm15, %v120_v60, %v118_v62 }
  0x8f   :  { %v125_v2 = vand.u32 2147483647, %v124_v1 }
  0x91   :  { %v127_v3 = vor.u32 %v126_v63, %v125_v2 }
  0x93   :  { %v128_v4 = vmul.f32 2.0, %v127_v3 }
  0x95   :  { %v130_v5 = vsel %vm52_vm1, %v128_v4, 0.0 }
  0x96   :  { %131 = vadd.xlane.f32.xlu0 %v130_v5 }
 0x123   :  { %v132_v6 = vpop.xlane.xlu0 %131 }
 0x124   :  { %v133_v7 = vrot.slane %v132_v6, 4 }
 0x126   :  { %v134_v8 = vadd.f32 %v133_v7, %v132_v6 }
 0x128   :  { %v135_v0 = vrot.slane %v134_v8, 2 }
 0x12a   :  { %v136_v9 = vadd.f32 %v135_v0, %v134_v8 }
 0x12c   :  { %v137_v10 = vrot.slane %v136_v9, 1 }
 0x12e   :  { %v138_v11 = vadd.f32 %v137_v10, %v136_v9 }
 0x130   :  { %162 = vpush %v138_v11 }
 0x161   :  { %s163_s7 = spop %162 }
 0x162   :  { %v140_v13 = vstv %s163_s7 }
 0x163   :  { %v141_v14 = vadd.f32 %v140_v13, %v129_v12 }
 0x165   :  { %143 = vst.msk [vmem:[#allocation7] sm:$0x1] %vm44_vm0, %v141_v14 }
 0x166   :  { %232 = shalt.err (!%p229_p6)
}
 0x167   :  { %s233_s12 = scalar_lea.hbm %s315_s2, 16 }
 0x168   :  { %p234_p7 = scmp.ne.s32.totalorder %s315_s2, %s233_s12  ;;  %p237_p8 = scmp.lt.u32.totalorder %s233_s12, %s315_s2 }
 0x16a   :  { %p239_p9 = pnand %p237_p8, %p234_p7 }
 0x16c   :  { %242 = shalt.err (!%p239_p9)
}
 0x16d   :  { %153 = dma.vmem_to_hbm [thread:$0]  %s151_s6, 16, %s315_s2, [#allocation4]  }
 0x16e   :  { %247 = dma.done.wait [#allocation4], 16  }
 0x16f   :  { %248 = vsyncadd [#allocation4], 4294967280 }
 0x170   :  { %157 = vsyncpa [#allocation3], 1 }
 0x171   :  { %158 = vsyncpa [#allocation6], 1 }
 0x172   :  { %159 = vsyncpa [#allocation4], 1 }

</bundles_post_ra>
